<compile_context>
chip_gen: v7x
topology: tpu7x:2x2x1
jax: 0.10.0
libtpu: 0.0.40
codegen_flags: <defaults>
</compile_context>

<pallas_src>
import jax
import jax.numpy as jnp
from jax.experimental import pallas as pl
from jax.experimental.pallas import tpu as pltpu

EPS = 1e-5


def _round_up(n, m):
    return ((n + m - 1) // m) * m


# ---------------------------------------------------------------------------
# Kernel: one batch tile per grid step.
# ---------------------------------------------------------------------------
def classifier_kernel(x_ref, w1_ref, b1_ref, w2_ref, b2_ref, w3_ref, b3_ref, o_ref):
    # ---- Linear(256 -> 64) + ReLU  (bf16 inputs, f32 MXU accumulation) ----
    h1 = jnp.dot(x_ref[...], w1_ref[...], preferred_element_type=jnp.float32) + b1_ref[...]
    h1 = jnp.maximum(h1, 0.0)

    # BN1 (eval, running stats) + Dropout (identity) were folded into (w2, b2) at init time.
    # ---- Linear(64 -> 32) + ReLU ----
    h2 = jnp.dot(h1, w2_ref[...], preferred_element_type=jnp.float32) + b2_ref[...]
    h2 = jnp.maximum(h2, 0.0)

    # BN2 (eval) + Dropout (identity) folded into (w3, b3).
    # ---- Linear(32 -> 1) ----
    out = jnp.dot(h2, w3_ref[...], preferred_element_type=jnp.float32) + b3_ref[...]
    o_ref[...] = out.astype(o_ref.dtype)


# ---------------------------------------------------------------------------
# One-time parameter transform: fold eval-mode BN into the following Linear.
#   relu(x@w1+b1) * a1 + c1  then  @ w2 + b2
#     == relu(x@w1+b1) @ (diag(a1) @ w2) + (c1 @ w2 + b2)
# ---------------------------------------------------------------------------
def fold_params(params):
    (w1, b1, g1, be1, m1, v1,
     w2, b2, g2, be2, m2, v2,
     w3, b3) = params

    a1 = g1 * jax.lax.rsqrt(v1 + EPS)          # (1, 64)
    c1 = be1 - m1 * a1                         # (1, 64)
    w2f = a1.T * w2                            # scale rows of w2 -> (64, 32)
    b2f = b2 + c1 @ w2                         # (1, 32)

    a2 = g2 * jax.lax.rsqrt(v2 + EPS)          # (1, 32)
    c2 = be2 - m2 * a2                         # (1, 32)
    w3f = a2.T * w3                            # (32, 1)
    b3f = b3 + c2 @ w3                         # (1, 1)

    # First matmul dominates HBM traffic & MXU work -> store its weight in bf16.
    return (w1.astype(jnp.bfloat16), b1, w2f, b2f, w3f, b3f)


# ---------------------------------------------------------------------------
# Wrapper: batch-tiled pallas_call with resident weights.
# ---------------------------------------------------------------------------
def classifier_forward(x, folded, *, tile_n=1024):
    w1, b1, w2, b2, w3, b3 = folded
    n = x.shape[0]

    x = x.astype(jnp.bfloat16)                 # halve HBM read of the dominant input

    tile = min(tile_n, _round_up(n, 8))        # sublane-aligned tile, capped at 1024 rows
    n_pad = _round_up(n, tile)
    if n_pad != n:
        x = jnp.pad(x, ((0, n_pad - n), (0, 0)))
    grid = (n_pad // tile,)

    def resident(a):                           # full-extent block, VMEM-resident across steps
        return pl.BlockSpec(a.shape, lambda i, _nd=a.ndim: (0,) * _nd)

    out = pl.pallas_call(
        classifier_kernel,
        out_shape=jax.ShapeDtypeStruct((n_pad, 1), jnp.float32),
        grid=grid,
        in_specs=[
            pl.BlockSpec((tile, 256), lambda i: (i, 0)),   # x: pipelined batch tiles
            resident(w1), resident(b1),
            resident(w2), resident(b2),
            resident(w3), resident(b3),
        ],
        out_specs=pl.BlockSpec((tile, 1), lambda i: (i, 0)),
        compiler_params=pltpu.CompilerParams(
            dimension_semantics=("parallel",),             # megacore-shardable batch axis
            vmem_limit_bytes=32 * 1024 * 1024,             # headroom; actual use ~3 MiB/tile
        ),
    )(x, w1, b1, w2, b2, w3, b3)

    return out[:n]


# ---------------------------------------------------------------------------
# Init + references
# ---------------------------------------------------------------------------
def init_params(key):
    """Deterministic parameter init (PyTorch-style uniform fan-in bounds for Linear layers)."""
    ks = jax.random.split(key, 8)

    def linear(kw, kb, d_in, d_out):
        bound = 1.0 / jnp.sqrt(d_in)
        w = jax.random.uniform(kw, (d_in, d_out), jnp.float32, -bound, bound)
        b = jax.random.uniform(kb, (1, d_out), jnp.float32, -bound, bound)
        return w, b

    w1, b1 = linear(ks[0], ks[1], 256, 64)
    w2, b2 = linear(ks[2], ks[3], 64, 32)
    w3, b3 = linear(ks[4], ks[5], 32, 1)

    # BatchNorm: PyTorch default gamma=1, beta=0, mean=0, var=1; perturb gamma slightly
    # (deterministically) so the BN path is exercised non-trivially.
    g1 = jnp.ones((1, 64), jnp.float32) + 0.01 * jax.random.normal(ks[6], (1, 64))
    be1 = jnp.zeros((1, 64), jnp.float32)
    m1 = jnp.zeros((1, 64), jnp.float32)
    v1 = jnp.ones((1, 64), jnp.float32)

    g2 = jnp.ones((1, 32), jnp.float32) + 0.01 * jax.random.normal(ks[7], (1, 32))
    be2 = jnp.zeros((1, 32), jnp.float32)
    m2 = jnp.zeros((1, 32), jnp.float32)
    v2 = jnp.ones((1, 32), jnp.float32)

    return (w1, b1, g1, be1, m1, v1,
            w2, b2, g2, be2, m2, v2,
            w3, b3)


def reference_forward_f32(x, params):
    """Unfused f32 reference matching the original PyTorch module (eval mode)."""
    (w1, b1, g1, be1, m1, v1,
     w2, b2, g2, be2, m2, v2,
     w3, b3) = params
    h1 = jnp.maximum(x @ w1 + b1, 0.0)
    h1 = (h1 - m1) * jax.lax.rsqrt(v1 + EPS) * g1 + be1
    h2 = jnp.maximum(h1 @ w2 + b2, 0.0)
    h2 = (h2 - m2) * jax.lax.rsqrt(v2 + EPS) * g2 + be2
    return h2 @ w3 + b3


def reference_forward_matched(x, folded):
    """Same folded params / bf16 input dtype as the kernel."""
    w1, b1, w2, b2, w3, b3 = folded
    xb = x.astype(jnp.bfloat16)
    h1 = jnp.maximum(jnp.dot(xb, w1, preferred_element_type=jnp.float32) + b1, 0.0)
    h2 = jnp.maximum(jnp.dot(h1, w2, preferred_element_type=jnp.float32) + b2, 0.0)
    return jnp.dot(h2, w3, preferred_element_type=jnp.float32) + b3


if __name__ == "__main__":
    key = jax.random.PRNGKey(0)
    k_x1, k_x2, k_p = jax.random.split(key, 3)

    params = init_params(k_p)
    folded = fold_params(params)

    # Case 1: small batch (single grid step).  Case 2: multi-tile grid + padding path.
    for n_rows, kx in ((16, k_x1), (2500, k_x2)):
        x = jax.random.normal(kx, (n_rows, 256), jnp.float32)

        out = jax.block_until_ready(classifier_forward(x, folded))
        assert out.shape == (n_rows, 1), out.shape

        ref_matched = reference_forward_matched(x, folded)
        assert jnp.allclose(out, ref_matched, atol=2e-2, rtol=2e-2), \
            "mismatch vs matched-dtype folded reference"

        ref_full = reference_forward_f32(x, params)
        assert jnp.allclose(out, ref_full, atol=3e-2, rtol=3e-2), \
            "mismatch vs original f32 reference"

    print("KERNEL_OK")
</pallas_src>

<mosaic_0001>
module attributes {stable_mosaic.version = 11 : i64} {
  func.func @classifier_kernel(%arg0: i32, %arg1: memref<16x256xbf16, #tpu.memory_space<vmem>>, %arg2: memref<256x64xbf16, #tpu.memory_space<vmem>>, %arg3: memref<1x64xf32, #tpu.memory_space<vmem>>, %arg4: memref<64x32xf32, #tpu.memory_space<vmem>>, %arg5: memref<1x32xf32, #tpu.memory_space<vmem>>, %arg6: memref<32x1xf32, #tpu.memory_space<vmem>>, %arg7: memref<1x1xf32, #tpu.memory_space<vmem>>, %arg8: memref<16x1xf32, #tpu.memory_space<vmem>>) attributes {dimension_semantics = [#tpu.dimension_semantics<parallel>], iteration_bounds = array<i64: 1>, scalar_prefetch = 0 : i64, scratch_operands = 0 : i64, tpu.core_type = #tpu.core_type<tc>, window_params = [{transform_indices = @transform_0, window_bounds = array<i64: 16, 256>}, {pipeline_mode = #tpu.pipeline_mode<synchronous>, transform_indices = @transform_1, window_bounds = array<i64: 256, 64>}, {pipeline_mode = #tpu.pipeline_mode<synchronous>, transform_indices = @transform_2, window_bounds = array<i64: 1, 64>}, {pipeline_mode = #tpu.pipeline_mode<synchronous>, transform_indices = @transform_3, window_bounds = array<i64: 64, 32>}, {pipeline_mode = #tpu.pipeline_mode<synchronous>, transform_indices = @transform_4, window_bounds = array<i64: 1, 32>}, {pipeline_mode = #tpu.pipeline_mode<synchronous>, transform_indices = @transform_5, window_bounds = array<i64: 32, 1>}, {pipeline_mode = #tpu.pipeline_mode<synchronous>, transform_indices = @transform_6, window_bounds = array<i64: 1, 1>}, {transform_indices = @transform_7, window_bounds = array<i64: 16, 1>}]} {
    %c0 = arith.constant 0 : index
    %c0_0 = arith.constant 0 : index
    %0 = vector.load %arg1[%c0, %c0_0] : memref<16x256xbf16, #tpu.memory_space<vmem>>, vector<16x256xbf16>
    %c0_1 = arith.constant 0 : index
    %c0_2 = arith.constant 0 : index
    %1 = vector.load %arg2[%c0_1, %c0_2] : memref<256x64xbf16, #tpu.memory_space<vmem>>, vector<256x64xbf16>
    %cst = arith.constant dense<0.000000e+00> : vector<16x64xf32>
    %2 = tpu.matmul %0, %1, %cst {dimension_numbers = #tpu.dot_dimension_numbers<[1], [0], [0], [1], [0, 0, 1, 1], [], []>} : vector<16x256xbf16>, vector<256x64xbf16>, vector<16x64xf32> -> vector<16x64xf32>
    %c0_3 = arith.constant 0 : index
    %c0_4 = arith.constant 0 : index
    %3 = vector.load %arg3[%c0_3, %c0_4] : memref<1x64xf32, #tpu.memory_space<vmem>>, vector<1x64xf32>
    %4 = vector.broadcast %3 : vector<1x64xf32> to vector<16x64xf32>
    %5 = arith.addf %2, %4 : vector<16x64xf32>
    %cst_5 = arith.constant 0.000000e+00 : f32
    %6 = vector.broadcast %cst_5 : f32 to vector<16x64xf32>
    %7 = arith.maximumf %5, %6 : vector<16x64xf32>
    %c0_6 = arith.constant 0 : index
    %c0_7 = arith.constant 0 : index
    %8 = vector.load %arg4[%c0_6, %c0_7] : memref<64x32xf32, #tpu.memory_space<vmem>>, vector<64x32xf32>
    %cst_8 = arith.constant dense<0.000000e+00> : vector<16x32xf32>
    %9 = tpu.matmul %7, %8, %cst_8 {dimension_numbers = #tpu.dot_dimension_numbers<[1], [0], [0], [1], [0, 0, 1, 1], [], []>} : vector<16x64xf32>, vector<64x32xf32>, vector<16x32xf32> -> vector<16x32xf32>
    %c0_9 = arith.constant 0 : index
    %c0_10 = arith.constant 0 : index
    %10 = vector.load %arg5[%c0_9, %c0_10] : memref<1x32xf32, #tpu.memory_space<vmem>>, vector<1x32xf32>
    %11 = vector.broadcast %10 : vector<1x32xf32> to vector<16x32xf32>
    %12 = arith.addf %9, %11 : vector<16x32xf32>
    %cst_11 = arith.constant 0.000000e+00 : f32
    %13 = vector.broadcast %cst_11 : f32 to vector<16x32xf32>
    %14 = arith.maximumf %12, %13 : vector<16x32xf32>
    %c0_12 = arith.constant 0 : index
    %c0_13 = arith.constant 0 : index
    %15 = vector.load %arg6[%c0_12, %c0_13] : memref<32x1xf32, #tpu.memory_space<vmem>>, vector<32x1xf32>
    %cst_14 = arith.constant dense<0.000000e+00> : vector<16x1xf32>
    %16 = tpu.matmul %14, %15, %cst_14 {dimension_numbers = #tpu.dot_dimension_numbers<[1], [0], [0], [1], [0, 0, 1, 1], [], []>} : vector<16x32xf32>, vector<32x1xf32>, vector<16x1xf32> -> vector<16x1xf32>
    %c0_15 = arith.constant 0 : index
    %c0_16 = arith.constant 0 : index
    %17 = vector.load %arg7[%c0_15, %c0_16] : memref<1x1xf32, #tpu.memory_space<vmem>>, vector<1x1xf32>
    %18 = vector.broadcast %17 : vector<1x1xf32> to vector<16x1xf32>
    %19 = arith.addf %16, %18 : vector<16x1xf32>
    %c0_17 = arith.constant 0 : index
    %c0_18 = arith.constant 0 : index
    %20 = vector.load %arg8[%c0_17, %c0_18] : memref<16x1xf32, #tpu.memory_space<vmem>>, vector<16x1xf32>
    tpu.vector_store %arg8[%c0_17, %c0_18], %19 {strides = array<i32>} : memref<16x1xf32, #tpu.memory_space<vmem>>, vector<16x1xf32>,
    return
  }
  func.func @transform_0(%arg0: i32) -> (i32, i32) {
    %c0_i32 = arith.constant 0 : i32
    %c0_i32_0 = arith.constant 0 : i32
    return %arg0, %c0_i32 : i32, i32
  }
  func.func @transform_1(%arg0: i32) -> (i32, i32) {
    %c0_i32 = arith.constant 0 : i32
    %c0_i32_0 = arith.constant 0 : i32
    %c0_i32_1 = arith.constant 0 : i32
    return %c0_i32, %c0_i32_0 : i32, i32
  }
  func.func @transform_2(%arg0: i32) -> (i32, i32) {
    %c0_i32 = arith.constant 0 : i32
    %c0_i32_0 = arith.constant 0 : i32
    %c0_i32_1 = arith.constant 0 : i32
    return %c0_i32, %c0_i32_0 : i32, i32
  }
  func.func @transform_3(%arg0: i32) -> (i32, i32) {
    %c0_i32 = arith.constant 0 : i32
    %c0_i32_0 = arith.constant 0 : i32
    %c0_i32_1 = arith.constant 0 : i32
    return %c0_i32, %c0_i32_0 : i32, i32
  }
  func.func @transform_4(%arg0: i32) -> (i32, i32) {
    %c0_i32 = arith.constant 0 : i32
    %c0_i32_0 = arith.constant 0 : i32
    %c0_i32_1 = arith.constant 0 : i32
    return %c0_i32, %c0_i32_0 : i32, i32
  }
  func.func @transform_5(%arg0: i32) -> (i32, i32) {
    %c0_i32 = arith.constant 0 : i32
    %c0_i32_0 = arith.constant 0 : i32
    %c0_i32_1 = arith.constant 0 : i32
    return %c0_i32, %c0_i32_0 : i32, i32
  }
  func.func @transform_6(%arg0: i32) -> (i32, i32) {
    %c0_i32 = arith.constant 0 : i32
    %c0_i32_0 = arith.constant 0 : i32
    %c0_i32_1 = arith.constant 0 : i32
    return %c0_i32, %c0_i32_0 : i32, i32
  }
  func.func @transform_7(%arg0: i32) -> (i32, i32) {
    %c0_i32 = arith.constant 0 : i32
    %c0_i32_0 = arith.constant 0 : i32
    return %arg0, %c0_i32 : i32, i32
  }
}

</mosaic_0001>

<bundles_post_ra>
// kernel: tpu_custom_call.1
= control target key start
LH: loop header
LB: loop body
LE: loop exit
PB: predicated region body
PF: predicated region fallthrough
CT: control target
= control target key end

     0   :  { %vm234_vm0 = vcmask 523264   ;;  %vm329_vm1 = vcmask 261120   ;;  %vm411_vm2 = vcmask 7168   ;;  %s699_s1 = inlined_call_operand.vmem [shape: bf16[256,64], index: 1, kind: input, shape index: {}]   ;;  %s700_s0 = inlined_call_operand.vmem [shape: bf16[16,256], index: 0, kind: input, shape index: {}]   ;;  %s701_s3 = inlined_call_operand.vmem [shape: f32[64,32], index: 3, kind: input, shape index: {}]   ;;  %s702_s5 = inlined_call_operand.vmem [shape: f32[32,1], index: 5, kind: input, shape index: {}]   ;;  %s703_s2 = inlined_call_operand.vmem [shape: f32[1,64], index: 2, kind: input, shape index: {}]   ;;  %s704_s6 = inlined_call_operand.<no memory space> [shape: f32[1,1], index: 6, kind: input, shape index: {}]   ;;  %s705_s4 = inlined_call_operand.vmem [shape: f32[1,32], index: 4, kind: input, shape index: {}]   ;;  %s706_s7 = inlined_call_operand.vmem [shape: f32[16,1], index: 7, kind: output, shape index: {}]  }
   0x1   :  { %v535_v0 = vld [vmem:[%s699_s1 + $0x40] sm:$0xff]   ;;  %v537_v2 = vld [vmem:[%s699_s1 + $0x48] sm:$0xff]   ;;  %v539_v4 = vld [vmem:[%s699_s1 + $0x50] sm:$0xff]   ;;  %v12_v47 = vstv %s704_s6 }
   0x2   :  { %v536_v1 = vld [vmem:[%s699_s1] sm:$0xff]   ;;  %443 = vmatprep.subr.bf16.mxu0 %v535_v0  ;;  %v538_v3 = vld [vmem:[%s699_s1 + $0x8] sm:$0xff]   ;;  %v540_v5 = vld [vmem:[%s699_s1 + $0x10] sm:$0xff]   ;;  %13 = vst [vmem:[#allocation2] sm:$0x1] %v12_v47 }
   0x3   :  { %444 = vmatpush3.bf16.msra.mxu0 %v536_v1  ;;  %v541_v6 = vld [vmem:[%s699_s1 + $0x58] sm:$0xff]   ;;  %v543_v8 = vld [vmem:[%s699_s1 + $0x60] sm:$0xff]   ;;  %v545_v10 = vld [vmem:[%s699_s1 + $0x68] sm:$0xff]  }
   0x4   :  { %445 = vmatprep.subr.bf16.mxu0 %v537_v2  ;;  %v542_v7 = vld [vmem:[%s699_s1 + $0x18] sm:$0xff]   ;;  %v544_v9 = vld [vmem:[%s699_s1 + $0x20] sm:$0xff]   ;;  %v220_v13 = vld [vmem:[%s701_s3 + $0x8] sm:$0xff] }
   0x5   :  { %v553_v11 = vld [vmem:[%s700_s0 + $0x4] ss:$8 sps:$4 sm:$0xff]   ;;  %v221_v15 = vld [vmem:[%s701_s3 + $0x10] sm:$0xff]  ;;  %v222_v16 = vld [vmem:[%s701_s3 + $0x18] sm:$0xff] }
   0x6   :  { %v219_v12 = vld [vmem:[%s701_s3] sm:$0xff]  ;;  %v546_v17 = vld [vmem:[%s699_s1 + $0x28] sm:$0xff]   ;;  %208 = vmatprep.mubr.bf16.mxu0 %v553_v11  ;;  %v515_v18 = vpack.c.bf16 %v222_v16, %v221_v15  ;;  %v547_v19 = vld [vmem:[%s699_s1 + $0x70] sm:$0xff]  }
   0x7   :  { %446 = vmatpush3.bf16.msra.mxu0 %v538_v3  ;;  %v511_v14 = vpack.c.bf16 %v220_v13, %v219_v12  ;;  %v548_v20 = vld [vmem:[%s699_s1 + $0x30] sm:$0xff]   ;;  %v549_v21 = vld [vmem:[%s699_s1 + $0x78] sm:$0xff]   ;;  %v551_v23 = vld [vmem:[%s700_s0] ss:$8 sps:$4 sm:$0xff]  }
   0x8   :  { %447 = vmatprep.subr.bf16.mxu0 %v539_v4  ;;  %v550_v22 = vld [vmem:[%s699_s1 + $0x38] sm:$0xff]   ;;  %v223_v24 = vld [vmem:[%s701_s3 + $0x20] sm:$0xff]  ;;  %v224_v25 = vld [vmem:[%s701_s3 + $0x28] sm:$0xff] }
   0x9   :  { %512 = vmatprep.subr.bf16.mxu1 %v511_v14  ;;  %v519_v26 = vpack.c.bf16 %v224_v25, %v223_v24  ;;  %v225_v27 = vld [vmem:[%s701_s3 + $0x30] sm:$0xff]  ;;  %v226_v28 = vld [vmem:[%s701_s3 + $0x38] sm:$0xff]  ;;  %v318_v30 = vld [vmem:[%s702_s5] sm:$0xff] }
   0xa   :  { %514 = vmatpush3.bf16.msra.mxu1 %v511_v14  ;;  %v523_v29 = vpack.c.bf16 %v226_v28, %v225_v27  ;;  %v319_v31 = vld [vmem:[%s702_s5 + $0x8] sm:$0xff]  ;;  %v418_v35 = vld [vmem:[%s703_s2] ss:$0 sm:$0xff]  ;;  %v320_v44 = vld [vmem:[%s702_s5 + $0x10] sm:$0xff] }
   0xb   :  { %448 = vmatpush3.bf16.msra.mxu0 %v540_v5  ;;  %516 = vmatprep.subr.bf16.mxu1 %v515_v18  ;;  %v527_v32 = vpack.c.bf16 %v319_v31, %v318_v30  ;;  %v321_v45 = vld [vmem:[%s702_s5 + $0x18] sm:$0xff]  ;;  %v437_v48 = vld [vmem:[%s705_s4] ss:$0 sm:$0xff] }
   0xc   :  { %449 = vmatprep.subr.bf16.mxu0 %v541_v6  ;;  %v531_v46 = vpack.c.bf16 %v321_v45, %v320_v44  ;;  %v440_v55 = vld [vmem:[#allocation2] ss:$0 sm:$0xff] }
   0xe   :  { %518 = vmatpush3.bf16.msra.mxu1 %v515_v18 }
   0xf   :  { %450 = vmatpush3.bf16.msra.mxu0 %v542_v7  ;;  %520 = vmatprep.subr.bf16.mxu1 %v519_v26 }
  0x10   :  { %451 = vmatprep.subr.bf16.mxu0 %v543_v8 }
  0x12   :  { %522 = vmatpush3.bf16.msra.mxu1 %v519_v26 }
  0x13   :  { %452 = vmatpush3.bf16.msra.mxu0 %v544_v9  ;;  %524 = vmatprep.subr.bf16.mxu1 %v523_v29 }
  0x14   :  { %453 = vmatprep.subr.bf16.mxu0 %v545_v10 }
  0x16   :  { %526 = vmatpush3.bf16.msra.mxu1 %v523_v29 }
  0x17   :  { %454 = vmatpush3.bf16.msra.mxu0 %v546_v17  ;;  %528 = vmatprep.subr.bf16.mxu1 %v527_v32 }
  0x18   :  { %455 = vmatprep.subr.bf16.mxu0 %v547_v19 }
  0x1b   :  { %456 = vmatpush3.bf16.msra.mxu0 %v548_v20 }
  0x1c   :  { %457 = vmatprep.subr.bf16.mxu0 %v549_v21 }
  0x1f   :  { %458 = vmatpush3.bf16.msra.mxu0 %v550_v22 }
  0x22   :  { %209 = vmatmul.mubr.bf16.vlgmr.msra.gmra.mrb[0].mxu0 %v551_v23 }
  0xf5   :  { %v459_v33 = vpop.f32.mrb[0].mxu0 }
  0xf6   :  { %v460_v34 = vpop.f32.mrb[1].mxu0 }
  0xf7   :  { %v461_v36 = vadd.f32 %v460_v34, %v459_v33  ;;  %v462_v37 = vpop.f32.mrb[2].mxu0 }
  0xf8   :  { %v463_v38 = vpop.f32.mrb[3].mxu0 }
  0xf9   :  { %v464_v39 = vadd.f32 %v463_v38, %v462_v37  ;;  %v211_v40 = vadd.f32 %v461_v36, %v418_v35 }
  0xfb   :  { %v214_v41 = vadd.f32 %v464_v39, %v418_v35  ;;  %v217_v42 = vmax.f32 %v211_v40, 0.0 }
  0xfd   :  { %v218_v43 = vmax.f32 %v214_v41, 0.0  ;;  %497 = vmatprep.mubr.msk.f32.mxu1 %vm234_vm0, %v217_v42 }
  0xff   :  { %498 = vmatmul.mubr.msk.f32.vlgmr.msra.gmra.mrb[0].mxu1 %vm234_vm0, %v218_v43 }
 0x100   :  { %530 = vmatpush3.bf16.msra.mxu1 %v527_v32 }
 0x101   :  { %532 = vmatprep.subr.bf16.mxu1 %v531_v46 }
 0x104   :  { %534 = vmatpush3.bf16.msra.mxu1 %v531_v46 }
 0x1d2   :  { %v499_v49 = vpop.f32.mrb[0].mxu1 }
 0x1d3   :  { %v313_v50 = vadd.f32 %v499_v49, %v437_v48  ;;  %v307_v51 = vpop.f32.mrb[1].mxu1 }
 0x1d4   :  { %v308_v52 = vadd.f32 %v437_v48, %v307_v51 }
 0x1d5   :  { %v317_v54 = vmax.f32 %v313_v50, 0.0 }
 0x1d6   :  { %v316_v53 = vmax.f32 %v308_v52, 0.0 }
 0x1d8   :  { %508 = vmatprep.mubr.msk.f32.mxu1 %vm329_vm1, %v316_v53 }
 0x1d9   :  { %509 = vmatmul.mubr.msk.f32.vlgmr.msra.gmra.mrb[2].mxu1 %vm329_vm1, %v317_v54 }
 0x2ac   :  { %v510_v56 = vpop.f32.mrb[2].mxu1 }
 0x2ad   :  { %v408_v57 = vadd.f32 %v510_v56, %v440_v55  ;;  %v402_v58 = vpop.f32.mrb[3].mxu1 }
 0x2ae   :  { %v403_v59 = vadd.f32 %v440_v55, %v402_v58 }
 0x2af   :  { %413 = vst.msk [vmem:[%s706_s7 + $0x8] sm:$0xff] %vm411_vm2, %v408_v57 }
 0x2b0   :  { %412 = vst.msk [vmem:[%s706_s7] sm:$0xff] %vm411_vm2, %v403_v59 }

</bundles_post_ra>
